<compile_context>
chip_gen: v6e
topology: v6e:2x2x1
jax: 0.10.0
libtpu: 0.0.40
codegen_flags: <defaults>
</compile_context>

<pallas_src>
import functools

import numpy as np
import jax
import jax.numpy as jnp
from jax.experimental import pallas as pl
from jax.experimental.pallas import tpu as pltpu


def make_fixed_filter(size, prec):
    """Deterministic fixed filter, exactly as in FixedConv2d.__init__."""
    A, B = np.mgrid[0:size[0] + 1, 0:size[1] + 1].astype(np.float64)
    A = A - size[0] / 2
    B = B - size[1] / 2
    f = np.sqrt(A * A + B * B)
    f = np.exp(-f / prec)
    return f  # (Kh, Kw)


def _banded_filter_matrices(f_np, Wp, Wout):
    """B[i, j+w, w] = f[i, j]  so that  (xp_rows_i @ B[i])[y, w] =
    sum_j f[i, j] * xp[y+i, w+j]  (cross-correlation, like F.conv2d)."""
    Kh, Kw = f_np.shape
    B = np.zeros((Kh, Wp, Wout), np.float32)
    w = np.arange(Wout)
    for i in range(Kh):
        for j in range(Kw):
            B[i, j + w, w] = np.float32(f_np[i, j])
    return B


def _fixedconv_kernel(b_ref, x_ref, o_ref, xp_ref, *,
                      Nb, Kh, H, W, pad, Hp, Wp, Hout, Wout, prec):
    # b_ref : (Kh, Wp, Wout) banded filter matrices (VMEM, same block every step)
    # x_ref : (Nb, 1, H, W)  channel-0 image block (channel picked by index_map)
    # o_ref : (Nb, 1, Hout, Wout) output block
    # xp_ref: (Nb, Hp, Wp)   VMEM scratch holding the value-1 padded images

    # Fused ConstantPad2d(pad, value=1): fill only the border strips with 1
    # (cheap, idempotent, safe under megacore "parallel"), then copy the
    # channel-0 image into the interior.
    if pad > 0:
        xp_ref[:, 0:pad, :] = jnp.ones((Nb, pad, Wp), jnp.float32)            # top
        xp_ref[:, pad + H:Hp, :] = jnp.ones((Nb, Hp - pad - H, Wp), jnp.float32)  # bottom
        xp_ref[:, :, 0:pad] = jnp.ones((Nb, Hp, pad), jnp.float32)            # left
        xp_ref[:, :, pad + W:Wp] = jnp.ones((Nb, Hp, Wp - pad - W), jnp.float32)  # right
    xp_ref[:, pad:pad + H, pad:pad + W] = x_ref[:, 0, :, :].astype(jnp.float32)

    # Hoist the banded matrices out of the batch loop.
    bmats = [b_ref[i] for i in range(Kh)]

    for b in range(Nb):
        # W-reduction on the MXU:  acc[y, w] = sum_i (xp[b, i:i+Hout, :] @ B_i)[y, w]
        # Accumulator initialized from tap 0 (no zeros + add).
        acc = jnp.dot(xp_ref[b, 0:Hout, :], bmats[0],
                      preferred_element_type=jnp.float32)
        for i in range(1, Kh):
            acc = acc + jnp.dot(xp_ref[b, i:i + Hout, :], bmats[i],
                                preferred_element_type=jnp.float32)
        # Epilogue: -prec * log(conv) on the EUP.
        # NOTE: for Wout >= 128 (realistic Unet maps) this store is lane-dense;
        # for tiny maps the Nb-batching amortizes the masked-store overhead.
        o_ref[b, 0, :, :] = (-prec) * jnp.log(acc)


@functools.partial(jax.jit, static_argnames=("size", "prec"))
def fixed_conv2d(x, size=(4, 4), prec=1.0):
    """x: (N, C, H, W). Returns (N, 1, Hout, Wout) float32."""
    N, C, H, W = x.shape
    f_np = make_fixed_filter(size, prec)
    Kh, Kw = f_np.shape
    pad = Kh // 2                       # padding = floor(f.size(2)/2), all 4 sides
    Hp, Wp = H + 2 * pad, W + 2 * pad
    Hout, Wout = Hp - Kh + 1, Wp - Kw + 1

    Bmat = jnp.asarray(_banded_filter_matrices(f_np, Wp, Wout))  # (Kh, Wp, Wout)

    # Images per grid step: amortize per-step overhead for small maps while
    # keeping (2x input + 2x output + scratch + 2x B blocks) well under the
    # 32 MiB scoped-VMEM limit.
    per_img_bytes = 9 * H * W * 4
    Nb = int(max(1, min(N, 16, (16 * 2 ** 20) // max(per_img_bytes, 1))))
    grid = (pl.cdiv(N, Nb),)

    kernel = functools.partial(
        _fixedconv_kernel, Nb=Nb, Kh=Kh, H=H, W=W, pad=pad,
        Hp=Hp, Wp=Wp, Hout=Hout, Wout=Wout, prec=float(prec))

    out = pl.pallas_call(
        kernel,
        out_shape=jax.ShapeDtypeStruct((N, 1, Hout, Wout), jnp.float32),
        grid=grid,
        in_specs=[
            # Banded filter matrices: whole array, same block every step
            # (Pallas does not re-DMA an unchanged block index).
            pl.BlockSpec((Kh, Wp, Wout), lambda n: (0, 0, 0)),
            # Input images: Nb batch elements, CHANNEL 0 ONLY (fused select),
            # full spatial extent.  Only channel 0 is ever read from HBM.
            pl.BlockSpec((Nb, 1, H, W), lambda n: (n, 0, 0, 0)),
        ],
        out_specs=pl.BlockSpec((Nb, 1, Hout, Wout), lambda n: (n, 0, 0, 0)),
        scratch_shapes=[pltpu.VMEM((Nb, Hp, Wp), jnp.float32)],
        compiler_params=pltpu.CompilerParams(
            dimension_semantics=("parallel",),
            vmem_limit_bytes=32 * 1024 * 1024,
        ),
    )(Bmat, x)
    return out


if __name__ == "__main__":
    # Small deterministic example consistent with the module's forward.
    N, C, H, W = 2, 4, 16, 16
    size = (4, 4)          # -> 5x5 filter, padding 2, "same" output size
    prec = 1.0

    key = jax.random.PRNGKey(0)
    # Positive inputs so log() stays finite (module takes log of conv output).
    x = jax.random.uniform(key, (N, C, H, W), dtype=jnp.float32,
                           minval=0.5, maxval=1.5)

    out = fixed_conv2d(x, size=size, prec=prec)
    out = jax.block_until_ready(out)
    assert out.shape == (N, 1, H, W), out.shape

    # Pure-numpy reference of the same forward (float32 precision).
    f_ref = make_fixed_filter(size, prec).astype(np.float32)
    Kh, Kw = f_ref.shape
    pad = Kh // 2
    x0 = np.asarray(x)[:, 0, :, :].astype(np.float32)
    xp = np.pad(x0, ((0, 0), (pad, pad), (pad, pad)),
                mode="constant", constant_values=1.0)
    ref = np.zeros((N, H, W), dtype=np.float32)
    for i in range(Kh):
        for j in range(Kw):
            ref += f_ref[i, j] * xp[:, i:i + H, j:j + W]
    ref = (-prec * np.log(ref))[:, None, :, :]

    # Tolerance sized for MXU default matmul precision (bf16 multiplicands,
    # f32 accumulation); also covers the documented f32-vs-f64 delta.
    np.testing.assert_allclose(np.asarray(out), ref, rtol=1e-2, atol=1e-2)
    print("KERNEL_OK")
</pallas_src>

<mosaic_0001>
module attributes {stable_mosaic.version = 11 : i64} {
  func.func @_fixedconv_kernel(%arg0: i32, %arg1: memref<5x20x16xf32, #tpu.memory_space<vmem>>, %arg2: memref<2x1x16x16xf32, #tpu.memory_space<vmem>>, %arg3: memref<2x1x16x16xf32, #tpu.memory_space<vmem>>, %arg4: memref<2x20x20xf32, #tpu.memory_space<vmem>>) attributes {dimension_semantics = [#tpu.dimension_semantics<parallel>], iteration_bounds = array<i64: 1>, scalar_prefetch = 0 : i64, scratch_operands = 1 : i64, tpu.core_type = #tpu.core_type<tc>, window_params = [{pipeline_mode = #tpu.pipeline_mode<synchronous>, transform_indices = @transform_0, window_bounds = array<i64: 5, 20, 16>}, {transform_indices = @transform_1, window_bounds = array<i64: 2, 1, 16, 16>}, {transform_indices = @transform_2, window_bounds = array<i64: 2, 1, 16, 16>}]} {
    %cst = arith.constant 1.000000e+00 : f32
    %0 = vector.broadcast %cst : f32 to vector<2x2x20xf32>
    %c0 = arith.constant 0 : index
    %c0_0 = arith.constant 0 : index
    %c0_1 = arith.constant 0 : index
    %1 = vector.load %arg4[%c0, %c0_0, %c0_1] : memref<2x20x20xf32, #tpu.memory_space<vmem>>, vector<2x2x20xf32>
    tpu.vector_store %arg4[%c0, %c0_0, %c0_1], %0 {strides = array<i32>} : memref<2x20x20xf32, #tpu.memory_space<vmem>>, vector<2x2x20xf32>,
    %cst_2 = arith.constant 1.000000e+00 : f32
    %2 = vector.broadcast %cst_2 : f32 to vector<2x2x20xf32>
    %c0_3 = arith.constant 0 : index
    %c18 = arith.constant 18 : index
    %c0_4 = arith.constant 0 : index
    %3 = vector.load %arg4[%c0_3, %c18, %c0_4] : memref<2x20x20xf32, #tpu.memory_space<vmem>>, vector<2x2x20xf32>
    tpu.vector_store %arg4[%c0_3, %c18, %c0_4], %2 {strides = array<i32>} : memref<2x20x20xf32, #tpu.memory_space<vmem>>, vector<2x2x20xf32>,
    %cst_5 = arith.constant 1.000000e+00 : f32
    %4 = vector.broadcast %cst_5 : f32 to vector<2x20x2xf32>
    %c0_6 = arith.constant 0 : index
    %c0_7 = arith.constant 0 : index
    %c0_8 = arith.constant 0 : index
    %5 = vector.load %arg4[%c0_6, %c0_7, %c0_8] : memref<2x20x20xf32, #tpu.memory_space<vmem>>, vector<2x20x2xf32>
    tpu.vector_store %arg4[%c0_6, %c0_7, %c0_8], %4 {strides = array<i32>} : memref<2x20x20xf32, #tpu.memory_space<vmem>>, vector<2x20x2xf32>,
    %cst_9 = arith.constant 1.000000e+00 : f32
    %6 = vector.broadcast %cst_9 : f32 to vector<2x20x2xf32>
    %c0_10 = arith.constant 0 : index
    %c0_11 = arith.constant 0 : index
    %c18_12 = arith.constant 18 : index
    %7 = vector.load %arg4[%c0_10, %c0_11, %c18_12] : memref<2x20x20xf32, #tpu.memory_space<vmem>>, vector<2x20x2xf32>
    tpu.vector_store %arg4[%c0_10, %c0_11, %c18_12], %6 {strides = array<i32>} : memref<2x20x20xf32, #tpu.memory_space<vmem>>, vector<2x20x2xf32>,
    %c0_13 = arith.constant 0 : index
    %c0_14 = arith.constant 0 : index
    %c0_15 = arith.constant 0 : index
    %c0_16 = arith.constant 0 : index
    %8 = vector.load %arg2[%c0_13, %c0_14, %c0_15, %c0_16] : memref<2x1x16x16xf32, #tpu.memory_space<vmem>>, vector<2x1x16x16xf32>
    %9 = vector.shape_cast %8 : vector<2x1x16x16xf32> to vector<2x16x16xf32>
    %c0_17 = arith.constant 0 : index
    %c2 = arith.constant 2 : index
    %c2_18 = arith.constant 2 : index
    %10 = vector.load %arg4[%c0_17, %c2, %c2_18] : memref<2x20x20xf32, #tpu.memory_space<vmem>>, vector<2x16x16xf32>
    tpu.vector_store %arg4[%c0_17, %c2, %c2_18], %9 {strides = array<i32>} : memref<2x20x20xf32, #tpu.memory_space<vmem>>, vector<2x16x16xf32>,
    %c0_19 = arith.constant 0 : index
    %c0_20 = arith.constant 0 : index
    %c0_21 = arith.constant 0 : index
    %11 = vector.load %arg1[%c0_19, %c0_20, %c0_21] : memref<5x20x16xf32, #tpu.memory_space<vmem>>, vector<1x20x16xf32>
    %12 = vector.shape_cast %11 : vector<1x20x16xf32> to vector<20x16xf32>
    %c1 = arith.constant 1 : index
    %c0_22 = arith.constant 0 : index
    %c0_23 = arith.constant 0 : index
    %13 = vector.load %arg1[%c1, %c0_22, %c0_23] : memref<5x20x16xf32, #tpu.memory_space<vmem>>, vector<1x20x16xf32>
    %14 = vector.shape_cast %13 : vector<1x20x16xf32> to vector<20x16xf32>
    %c2_24 = arith.constant 2 : index
    %c0_25 = arith.constant 0 : index
    %c0_26 = arith.constant 0 : index
    %15 = vector.load %arg1[%c2_24, %c0_25, %c0_26] : memref<5x20x16xf32, #tpu.memory_space<vmem>>, vector<1x20x16xf32>
    %16 = vector.shape_cast %15 : vector<1x20x16xf32> to vector<20x16xf32>
    %c3 = arith.constant 3 : index
    %c0_27 = arith.constant 0 : index
    %c0_28 = arith.constant 0 : index
    %17 = vector.load %arg1[%c3, %c0_27, %c0_28] : memref<5x20x16xf32, #tpu.memory_space<vmem>>, vector<1x20x16xf32>
    %18 = vector.shape_cast %17 : vector<1x20x16xf32> to vector<20x16xf32>
    %c4 = arith.constant 4 : index
    %c0_29 = arith.constant 0 : index
    %c0_30 = arith.constant 0 : index
    %19 = vector.load %arg1[%c4, %c0_29, %c0_30] : memref<5x20x16xf32, #tpu.memory_space<vmem>>, vector<1x20x16xf32>
    %20 = vector.shape_cast %19 : vector<1x20x16xf32> to vector<20x16xf32>
    %c0_31 = arith.constant 0 : index
    %c0_32 = arith.constant 0 : index
    %c0_33 = arith.constant 0 : index
    %21 = vector.load %arg4[%c0_31, %c0_32, %c0_33] : memref<2x20x20xf32, #tpu.memory_space<vmem>>, vector<1x16x20xf32>
    %22 = vector.shape_cast %21 : vector<1x16x20xf32> to vector<16x20xf32>
    %cst_34 = arith.constant dense<0.000000e+00> : vector<16x16xf32>
    %23 = tpu.matmul %22, %12, %cst_34 {dimension_numbers = #tpu.dot_dimension_numbers<[1], [0], [0], [1], [0, 0, 1, 1], [], []>} : vector<16x20xf32>, vector<20x16xf32>, vector<16x16xf32> -> vector<16x16xf32>
    %c0_35 = arith.constant 0 : index
    %c1_36 = arith.constant 1 : index
    %c0_37 = arith.constant 0 : index
    %24 = vector.load %arg4[%c0_35, %c1_36, %c0_37] : memref<2x20x20xf32, #tpu.memory_space<vmem>>, vector<1x16x20xf32>
    %25 = vector.shape_cast %24 : vector<1x16x20xf32> to vector<16x20xf32>
    %cst_38 = arith.constant dense<0.000000e+00> : vector<16x16xf32>
    %26 = tpu.matmul %25, %14, %cst_38 {dimension_numbers = #tpu.dot_dimension_numbers<[1], [0], [0], [1], [0, 0, 1, 1], [], []>} : vector<16x20xf32>, vector<20x16xf32>, vector<16x16xf32> -> vector<16x16xf32>
    %27 = arith.addf %23, %26 : vector<16x16xf32>
    %c0_39 = arith.constant 0 : index
    %c2_40 = arith.constant 2 : index
    %c0_41 = arith.constant 0 : index
    %28 = vector.load %arg4[%c0_39, %c2_40, %c0_41] : memref<2x20x20xf32, #tpu.memory_space<vmem>>, vector<1x16x20xf32>
    %29 = vector.shape_cast %28 : vector<1x16x20xf32> to vector<16x20xf32>
    %cst_42 = arith.constant dense<0.000000e+00> : vector<16x16xf32>
    %30 = tpu.matmul %29, %16, %cst_42 {dimension_numbers = #tpu.dot_dimension_numbers<[1], [0], [0], [1], [0, 0, 1, 1], [], []>} : vector<16x20xf32>, vector<20x16xf32>, vector<16x16xf32> -> vector<16x16xf32>
    %31 = arith.addf %27, %30 : vector<16x16xf32>
    %c0_43 = arith.constant 0 : index
    %c3_44 = arith.constant 3 : index
    %c0_45 = arith.constant 0 : index
    %32 = vector.load %arg4[%c0_43, %c3_44, %c0_45] : memref<2x20x20xf32, #tpu.memory_space<vmem>>, vector<1x16x20xf32>
    %33 = vector.shape_cast %32 : vector<1x16x20xf32> to vector<16x20xf32>
    %cst_46 = arith.constant dense<0.000000e+00> : vector<16x16xf32>
    %34 = tpu.matmul %33, %18, %cst_46 {dimension_numbers = #tpu.dot_dimension_numbers<[1], [0], [0], [1], [0, 0, 1, 1], [], []>} : vector<16x20xf32>, vector<20x16xf32>, vector<16x16xf32> -> vector<16x16xf32>
    %35 = arith.addf %31, %34 : vector<16x16xf32>
    %c0_47 = arith.constant 0 : index
    %c4_48 = arith.constant 4 : index
    %c0_49 = arith.constant 0 : index
    %36 = vector.load %arg4[%c0_47, %c4_48, %c0_49] : memref<2x20x20xf32, #tpu.memory_space<vmem>>, vector<1x16x20xf32>
    %37 = vector.shape_cast %36 : vector<1x16x20xf32> to vector<16x20xf32>
    %cst_50 = arith.constant dense<0.000000e+00> : vector<16x16xf32>
    %38 = tpu.matmul %37, %20, %cst_50 {dimension_numbers = #tpu.dot_dimension_numbers<[1], [0], [0], [1], [0, 0, 1, 1], [], []>} : vector<16x20xf32>, vector<20x16xf32>, vector<16x16xf32> -> vector<16x16xf32>
    %39 = arith.addf %35, %38 : vector<16x16xf32>
    %40 = math.log %39 : vector<16x16xf32>
    %cst_51 = arith.constant -1.000000e+00 : f32
    %41 = vector.broadcast %cst_51 : f32 to vector<16x16xf32>
    %42 = arith.mulf %41, %40 : vector<16x16xf32>
    %c0_52 = arith.constant 0 : index
    %c0_53 = arith.constant 0 : index
    %c0_54 = arith.constant 0 : index
    %c0_55 = arith.constant 0 : index
    %43 = vector.load %arg3[%c0_52, %c0_53, %c0_54, %c0_55] : memref<2x1x16x16xf32, #tpu.memory_space<vmem>>, vector<1x1x16x16xf32>
    %44 = vector.shape_cast %43 : vector<1x1x16x16xf32> to vector<16x16xf32>
    %45 = vector.shape_cast %42 : vector<16x16xf32> to vector<1x1x16x16xf32>
    tpu.vector_store %arg3[%c0_52, %c0_53, %c0_54, %c0_55], %45 {strides = array<i32>} : memref<2x1x16x16xf32, #tpu.memory_space<vmem>>, vector<1x1x16x16xf32>,
    %c1_56 = arith.constant 1 : index
    %c0_57 = arith.constant 0 : index
    %c0_58 = arith.constant 0 : index
    %46 = vector.load %arg4[%c1_56, %c0_57, %c0_58] : memref<2x20x20xf32, #tpu.memory_space<vmem>>, vector<1x16x20xf32>
    %47 = vector.shape_cast %46 : vector<1x16x20xf32> to vector<16x20xf32>
    %cst_59 = arith.constant dense<0.000000e+00> : vector<16x16xf32>
    %48 = tpu.matmul %47, %12, %cst_59 {dimension_numbers = #tpu.dot_dimension_numbers<[1], [0], [0], [1], [0, 0, 1, 1], [], []>} : vector<16x20xf32>, vector<20x16xf32>, vector<16x16xf32> -> vector<16x16xf32>
    %c1_60 = arith.constant 1 : index
    %c1_61 = arith.constant 1 : index
    %c0_62 = arith.constant 0 : index
    %49 = vector.load %arg4[%c1_60, %c1_61, %c0_62] : memref<2x20x20xf32, #tpu.memory_space<vmem>>, vector<1x16x20xf32>
    %50 = vector.shape_cast %49 : vector<1x16x20xf32> to vector<16x20xf32>
    %cst_63 = arith.constant dense<0.000000e+00> : vector<16x16xf32>
    %51 = tpu.matmul %50, %14, %cst_63 {dimension_numbers = #tpu.dot_dimension_numbers<[1], [0], [0], [1], [0, 0, 1, 1], [], []>} : vector<16x20xf32>, vector<20x16xf32>, vector<16x16xf32> -> vector<16x16xf32>
    %52 = arith.addf %48, %51 : vector<16x16xf32>
    %c1_64 = arith.constant 1 : index
    %c2_65 = arith.constant 2 : index
    %c0_66 = arith.constant 0 : index
    %53 = vector.load %arg4[%c1_64, %c2_65, %c0_66] : memref<2x20x20xf32, #tpu.memory_space<vmem>>, vector<1x16x20xf32>
    %54 = vector.shape_cast %53 : vector<1x16x20xf32> to vector<16x20xf32>
    %cst_67 = arith.constant dense<0.000000e+00> : vector<16x16xf32>
    %55 = tpu.matmul %54, %16, %cst_67 {dimension_numbers = #tpu.dot_dimension_numbers<[1], [0], [0], [1], [0, 0, 1, 1], [], []>} : vector<16x20xf32>, vector<20x16xf32>, vector<16x16xf32> -> vector<16x16xf32>
    %56 = arith.addf %52, %55 : vector<16x16xf32>
    %c1_68 = arith.constant 1 : index
    %c3_69 = arith.constant 3 : index
    %c0_70 = arith.constant 0 : index
    %57 = vector.load %arg4[%c1_68, %c3_69, %c0_70] : memref<2x20x20xf32, #tpu.memory_space<vmem>>, vector<1x16x20xf32>
    %58 = vector.shape_cast %57 : vector<1x16x20xf32> to vector<16x20xf32>
    %cst_71 = arith.constant dense<0.000000e+00> : vector<16x16xf32>
    %59 = tpu.matmul %58, %18, %cst_71 {dimension_numbers = #tpu.dot_dimension_numbers<[1], [0], [0], [1], [0, 0, 1, 1], [], []>} : vector<16x20xf32>, vector<20x16xf32>, vector<16x16xf32> -> vector<16x16xf32>
    %60 = arith.addf %56, %59 : vector<16x16xf32>
    %c1_72 = arith.constant 1 : index
    %c4_73 = arith.constant 4 : index
    %c0_74 = arith.constant 0 : index
    %61 = vector.load %arg4[%c1_72, %c4_73, %c0_74] : memref<2x20x20xf32, #tpu.memory_space<vmem>>, vector<1x16x20xf32>
    %62 = vector.shape_cast %61 : vector<1x16x20xf32> to vector<16x20xf32>
    %cst_75 = arith.constant dense<0.000000e+00> : vector<16x16xf32>
    %63 = tpu.matmul %62, %20, %cst_75 {dimension_numbers = #tpu.dot_dimension_numbers<[1], [0], [0], [1], [0, 0, 1, 1], [], []>} : vector<16x20xf32>, vector<20x16xf32>, vector<16x16xf32> -> vector<16x16xf32>
    %64 = arith.addf %60, %63 : vector<16x16xf32>
    %65 = math.log %64 : vector<16x16xf32>
    %cst_76 = arith.constant -1.000000e+00 : f32
    %66 = vector.broadcast %cst_76 : f32 to vector<16x16xf32>
    %67 = arith.mulf %66, %65 : vector<16x16xf32>
    %c1_77 = arith.constant 1 : index
    %c0_78 = arith.constant 0 : index
    %c0_79 = arith.constant 0 : index
    %c0_80 = arith.constant 0 : index
    %68 = vector.load %arg3[%c1_77, %c0_78, %c0_79, %c0_80] : memref<2x1x16x16xf32, #tpu.memory_space<vmem>>, vector<1x1x16x16xf32>
    %69 = vector.shape_cast %68 : vector<1x1x16x16xf32> to vector<16x16xf32>
    %70 = vector.shape_cast %67 : vector<16x16xf32> to vector<1x1x16x16xf32>
    tpu.vector_store %arg3[%c1_77, %c0_78, %c0_79, %c0_80], %70 {strides = array<i32>} : memref<2x1x16x16xf32, #tpu.memory_space<vmem>>, vector<1x1x16x16xf32>,
    return
  }
  func.func @transform_0(%arg0: i32) -> (i32, i32, i32) {
    %c0_i32 = arith.constant 0 : i32
    %c0_i32_0 = arith.constant 0 : i32
    %c0_i32_1 = arith.constant 0 : i32
    %c0_i32_2 = arith.constant 0 : i32
    return %c0_i32, %c0_i32_0, %c0_i32_1 : i32, i32, i32
  }
  func.func @transform_1(%arg0: i32) -> (i32, i32, i32, i32) {
    %c0_i32 = arith.constant 0 : i32
    %c0_i32_0 = arith.constant 0 : i32
    %c0_i32_1 = arith.constant 0 : i32
    %c0_i32_2 = arith.constant 0 : i32
    return %arg0, %c0_i32, %c0_i32_0, %c0_i32_1 : i32, i32, i32, i32
  }
  func.func @transform_2(%arg0: i32) -> (i32, i32, i32, i32) {
    %c0_i32 = arith.constant 0 : i32
    %c0_i32_0 = arith.constant 0 : i32
    %c0_i32_1 = arith.constant 0 : i32
    %c0_i32_2 = arith.constant 0 : i32
    return %arg0, %c0_i32, %c0_i32_0, %c0_i32_1 : i32, i32, i32, i32
  }
}

</mosaic_0001>

<bundles_post_ra>
// kernel: fixed_conv2d.1
= control target key start
LH: loop header
LB: loop body
LE: loop exit
PB: predicated region body
PF: predicated region fallthrough
CT: control target
= control target key end

     0   :  { %7 = vsyncpa [#allocation4], 0  ;;  %s1418_s0 = inlined_call_operand.hbm [shape: f32[5,20,16], index: 0, kind: input, shape index: {}]   ;;  %s1419_s1 = inlined_call_operand.hbm [shape: f32[2,4,16,16], index: 1, kind: input, shape index: {}]   ;;  %s1420_s2 = inlined_call_operand.hbm [shape: f32[2,1,16,16], index: 2, kind: output, shape index: {}]  }
   0x1   :  { %8 = vsyncpa [#allocation7], 0 }
   0x2   :  { %9 = vsyncpa [#allocation5], 0  ;;  %s1266_s9 = smov [#allocation3]  }
   0x3   :  { %s15_s10 = sshll.u32 %s1266_s9, 4  ;;  %s16_s10 = int_to_ptr.vmem [resolvable:$true] %s15_s10 }
   0x4   :  { %s1228_s11 = scalar_lea.vmem %s16_s10, 1920  ;;  %p1233_p1 = scmp.lt.s32.totalorder %s16_s10, %s16_s10 }
   0x5   :  { %p1229_p0 = scmp.ne.s32.totalorder %s16_s10, %s1228_s11  ;;  %p1234_p2 = scmp.lt.s32.totalorder %s1228_s11, %s1228_s11 }
   0x7   :  { %p1235_p3 = por %p1234_p2, %p1233_p1 }
   0x9   :  { %p1236_p4 = pnand %p1235_p3, %p1229_p0 }
   0xb   :  { %1239 = shalt.err (!%p1236_p4)
}
   0xc   :  { %s1267_s12 = smov 128   ;;  %s1268_s13 = smov 8  }
   0xd   :  { %21 = dma.hbm_to_vmem [thread:$0]  %s1418_s0, 1920, %s16_s10, [#allocation4], %s1267_s12, %s1267_s12, %s1268_s13  }
   0xe   :  { %s31_s16 = sld [smem:[#allocation0]]   ;;  %s1269_s17 = smov [#allocation6]  }
   0xf   :  { %s39_s18 = sshll.u32 %s1269_s17, 4  ;;  %s1270_s19 = smov 1024   ;;  %s40_s18 = int_to_ptr.vmem [resolvable:$true] %s39_s18 }
  0x10   :  { %46 = sst [smem:[#allocation10]] %s1270_s19  ;;  %s1271_s20 = smov 256  }
  0x11   :  { %48 = sst [smem:[#allocation10 + $0x1]] %s1271_s20  ;;  %s1272_s21 = smov 2  }
  0x12   :  { %50 = sst [smem:[#allocation10 + $0x2]] %s1272_s21  ;;  %s1273_s23 = smov 128  }
  0x13   :  { %52 = sst [smem:[#allocation10 + $0x3]] %s1273_s23  ;;  %s1274_s25 = smov 8  }
  0x14   :  { %s1026_s22 = sshll.u32 %s31_s16, 26  ;;  %54 = sst [smem:[#allocation10 + $0x4]] %s1273_s23 }
  0x15   :  { %s1027_s24 = sadd.s32 134217728, %s1026_s22  ;;  %56 = sst [smem:[#allocation10 + $0x5]] %s1274_s25 }
  0x16   :  { %s1275_s26 = smov [#allocation7]   ;;  %s1276_s27 = smov 131072  }
  0x17   :  { %58 = dma.general %s1419_s1, 512, %s40_s18, %s1275_s26, %s1276_s27, [#allocation10], %s1027_s24, 0  }
  0x18   :  { %1260 = dma.done.wait [#allocation4], 1920  }
  0x19   :  { %1261 = vsyncadd [#allocation4], 4294965376 }
  0x1a   :  { %1262 = dma.done.wait [#allocation7], 512  }
  0x1b   :  { %1263 = vsyncadd [#allocation7], 4294966784  ;;  %vm65_vm0 = vcmask 156672   ;;  %vm70_vm1 = vcmask 15360   ;;  %vm78_vm2 = vcmask 162960   ;;  %v1277_v0 = vmov 1.0  }
  0x1c   :  { %66 = vst.msk [vmem:[#allocation2] sm:$0x3] %vm65_vm0, %v1277_v0  ;;  %67 = vst.msk [vmem:[#allocation2 + $0x18] sm:$0x3] %vm65_vm0, %v1277_v0  ;;  %vm73_vm3 = vcmask 11264   ;;  %vm81_vm4 = vcmask 158864  }
  0x1d   :  { %72 = vst.msk [vmem:[#allocation2 + $0x8] sm:$0xff] %vm70_vm1, %v1277_v0  ;;  %76 = vst.msk [vmem:[#allocation2 + $0x20] sm:$0xff] %vm70_vm1, %v1277_v0  ;;  %vm141_vm5 = vcmask 1043456   ;;  %v86_v1 = vld [vmem:[#allocation6] sm:$0xff]  ;;  %v88_v2 = vld [vmem:[#allocation6 + $0x10] sm:$0xff]  ;;  %s1278_s1 = smov 2  }
  0x1e   :  { %68 = vst.msk [vmem:[#allocation2 + $0x12] sm:$0x3] %vm65_vm0, %v1277_v0  ;;  %69 = vst.msk [vmem:[#allocation2 + $0x2a] sm:$0x3] %vm65_vm0, %v1277_v0  ;;  %94 = vrot.lane.b32.xlu0 %v86_v1, %s1278_s1  ;;  %v87_v3 = vld [vmem:[#allocation6 + $0x8] sm:$0xff]  ;;  %98 = vrot.lane.b32.xlu1 %v88_v2, %s1278_s1  ;;  %v89_v6 = vld [vmem:[#allocation6 + $0x18] sm:$0xff] }
  0x1f   :  { %71 = vst.msk [vmem:[#allocation2] sm:$0xff] %vm70_vm1, %v1277_v0  ;;  %75 = vst.msk [vmem:[#allocation2 + $0x18] sm:$0xff] %vm70_vm1, %v1277_v0  ;;  %v1308_v4 = vld [vmem:[#allocation3 + $0x28] sm:$0xf]  ;;  %v1310_v5 = vld [vmem:[#allocation3 + $0x10] sm:$0xf] }
  0x20   :  { %80 = vst.msk [vmem:[#allocation2 + $0x8] sm:$0xff] %vm78_vm2, %v1277_v0  ;;  %84 = vst.msk [vmem:[#allocation2 + $0x20] sm:$0xff] %vm78_vm2, %v1277_v0  ;;  %1108 = vmatprep.subr.msk.mxu0 %vm141_vm5, %v1308_v4  ;;  %1117 = vmatprep.subr.msk.mxu1 %vm141_vm5, %v1310_v5  ;;  %v1316_v7 = vld [vmem:[#allocation3 + $0x20] sm:$0xff]  ;;  %v1318_v8 = vld [vmem:[#allocation3 + $0x8] sm:$0xff]  ;;  %vm106_vm6 = vcmask 146448   ;;  %vm134_vm7 = vcmask 162816  }
  0x21   :  { %74 = vst.msk [vmem:[#allocation2 + $0x10] sm:$0xf] %vm73_vm3, %v1277_v0  ;;  %77 = vst.msk [vmem:[#allocation2 + $0x28] sm:$0xf] %vm73_vm3, %v1277_v0  ;;  %1109 = vmatpush3.msk.msra.mxu0 %vm141_vm5, %v1308_v4  ;;  %1118 = vmatpush3.msk.msra.mxu1 %vm141_vm5, %v1310_v5  ;;  %v1326_v9 = vld [vmem:[#allocation3 + $0x18] sm:$0xff]  ;;  %v1328_v10 = vld [vmem:[#allocation3] sm:$0xff] }
  0x22   :  { %79 = vst.msk [vmem:[#allocation2] sm:$0xff] %vm78_vm2, %v1277_v0  ;;  %83 = vst.msk [vmem:[#allocation2 + $0x18] sm:$0xff] %vm78_vm2, %v1277_v0  ;;  %1110 = vmatprep.subr.mxu0 %v1316_v7  ;;  %1119 = vmatprep.subr.mxu1 %v1318_v8  ;;  %v1332_v11 = vld [vmem:[#allocation3 + $0x40] sm:$0xf]  ;;  %v1334_v12 = vld [vmem:[#allocation3 + $0x58] sm:$0xf] }
  0x23   :  { %82 = vst.msk [vmem:[#allocation2 + $0x10] sm:$0xf] %vm81_vm4, %v1277_v0  ;;  %85 = vst.msk [vmem:[#allocation2 + $0x28] sm:$0xf] %vm81_vm4, %v1277_v0  ;;  %96 = vrot.lane.b32.xlu0 %v87_v3, %s1278_s1  ;;  %100 = vrot.lane.b32.xlu1 %v89_v6, %s1278_s1  ;;  %v120_v21 = vld [vmem:[#allocation3 + $0x38] sm:$0xff]  ;;  %v1348_v22 = vld [vmem:[#allocation3 + $0x50] sm:$0xff] }
  0x24   :  { %1111 = vmatpush3.msra.mxu0 %v1316_v7  ;;  %1120 = vmatpush3.msra.mxu1 %v1318_v8  ;;  %v119_v25 = vld [vmem:[#allocation3 + $0x30] sm:$0xff]  ;;  %v1355_v26 = vld [vmem:[#allocation3 + $0x48] sm:$0xff]  ;;  %v127_v32 = vld [vmem:[#allocation3 + $0x60] sm:$0xff]  ;;  %vm574_vm8 = vcmask 130048   ;;  %s1279_s29 = smov [#allocation8]  }
  0x25   :  { %1112 = vmatprep.subr.mxu0 %v1326_v9  ;;  %1121 = vmatprep.subr.mxu1 %v1328_v10  ;;  %v129_v27 = vld [vmem:[#allocation3 + $0x70] sm:$0xf]  ;;  %v128_v30 = vld [vmem:[#allocation3 + $0x68] sm:$0xff]  ;;  %s1013_s30 = sshll.u32 %s1279_s29, 4  ;;  %s1014_s30 = int_to_ptr.vmem [resolvable:$true] %s1013_s30 }
  0x26   :  { %1113 = vmatpush3.msra.mxu0 %v1326_v9  ;;  %1122 = vmatpush3.msra.mxu1 %v1328_v10  ;;  %s1240_s3 = scalar_lea.vmem %s1014_s30, 512  ;;  %p1245_p6 = scmp.lt.s32.totalorder %s1014_s30, %s1014_s30 }
  0x27   :  { %1126 = vmatprep.subr.msk.mxu0 %vm141_vm5, %v1332_v11  ;;  %1135 = vmatprep.subr.msk.mxu1 %vm141_vm5, %v1334_v12  ;;  %p1241_p5 = scmp.ne.s32.totalorder %s1014_s30, %s1240_s3  ;;  %p1246_p7 = scmp.lt.s32.totalorder %s1240_s3, %s1240_s3 }
  0x29   :  { %p1247_p8 = por %p1246_p7, %p1245_p6 }
  0x2b   :  { %p1248_p9 = pnand %p1247_p8, %p1241_p5 }
  0x90   :  { %v95_v13 = vpop.permute.xlu0 %94  ;;  %v99_v14 = vpop.permute.xlu1 %98 }
  0x91   :  { %107 = vst.msk [vmem:[#allocation2 + $0x2] sm:$0xff] %vm106_vm6, %v95_v13  ;;  %109 = vst.msk [vmem:[#allocation2 + $0x1a] sm:$0xff] %vm106_vm6, %v99_v14 }
  0x95   :  { %v97_v15 = vpop.permute.xlu0 %96  ;;  %v101_v16 = vpop.permute.xlu1 %100 }
  0x96   :  { %108 = vst.msk [vmem:[#allocation2 + $0xa] sm:$0xff] %vm106_vm6, %v97_v15  ;;  %110 = vst.msk [vmem:[#allocation2 + $0x22] sm:$0xff] %vm106_vm6, %v101_v16 }
  0x98   :  { %v132_v17 = vld [vmem:[#allocation2 + $0x1] sm:$0xff]  ;;  %v580_v33 = vld [vmem:[#allocation2 + $0x19] sm:$0xff] }
  0x99   :  { %v130_v18 = vld [vmem:[#allocation2] sm:$0xff]  ;;  %1114 = vmatprep.mubr.msk.f32.mxu0 %vm134_vm7, %v132_v17  ;;  %v578_v36 = vld [vmem:[#allocation2 + $0x18] sm:$0xff] }
  0x9a   :  { %1123 = vmatprep.mubr.msk.f32.mxu1 %vm134_vm7, %v130_v18  ;;  %v304_v24 = vld [vmem:[#allocation2 + $0x2] sm:$0xff]  ;;  %v744_v37 = vld [vmem:[#allocation2 + $0x1a] sm:$0xff] }
  0x9d   :  { %v133_v19 = vld [vmem:[#allocation2 + $0x9] sm:$0xff]  ;;  %v581_v34 = vld [vmem:[#allocation2 + $0x21] sm:$0xff] }
  0x9e   :  { %v131_v20 = vld [vmem:[#allocation2 + $0x8] sm:$0xff]  ;;  %1115 = vmatmul.mubr.msk.f32.vlgmr.msra.gmra.mxu0 %vm134_vm7, %v133_v19  ;;  %v579_v38 = vld [vmem:[#allocation2 + $0x20] sm:$0xff] }
  0x9f   :  { %1124 = vmatmul.mubr.msk.f32.vlgmr.msra.gmra.mxu1 %vm134_vm7, %v131_v20  ;;  %v392_v23 = vld [vmem:[#allocation2 + $0x3] sm:$0xff]  ;;  %1127 = vmatpush3.msk.msra.mxu0 %vm141_vm5, %v1332_v11  ;;  %v393_v29 = vld [vmem:[#allocation2 + $0xb] sm:$0xff]  ;;  %v829_v40 = vld [vmem:[#allocation2 + $0x1b] sm:$0xff] }
  0xa0   :  { %1136 = vmatpush3.msk.msra.mxu1 %vm141_vm5, %v1334_v12  ;;  %1128 = vmatprep.subr.mxu0 %v120_v21  ;;  %v305_v28 = vld [vmem:[#allocation2 + $0xa] sm:$0xff]  ;;  %v745_v39 = vld [vmem:[#allocation2 + $0x22] sm:$0xff] }
  0xa1   :  { %1132 = vmatprep.mubr.msk.f32.mxu0 %vm134_vm7, %v304_v24  ;;  %1137 = vmatprep.subr.mxu1 %v1348_v22  ;;  %v480_v31 = vld [vmem:[#allocation2 + $0x4] sm:$0xff]  ;;  %v481_v35 = vld [vmem:[#allocation2 + $0xc] sm:$0xff]  ;;  %v914_v41 = vld [vmem:[#allocation2 + $0x1c] sm:$0xff] }
  0xa2   :  { %1141 = vmatprep.mubr.msk.f32.mxu1 %vm134_vm7, %v392_v23  ;;  %1129 = vmatpush3.msra.mxu0 %v120_v21  ;;  %v830_v42 = vld [vmem:[#allocation2 + $0x23] sm:$0xff] }
  0xa3   :  { %1138 = vmatpush3.msra.mxu1 %v1348_v22  ;;  %1130 = vmatprep.subr.mxu0 %v119_v25  ;;  %v915_v43 = vld [vmem:[#allocation2 + $0x24] sm:$0xff] }
  0xa4   :  { %1139 = vmatprep.subr.mxu1 %v1355_v26  ;;  %1131 = vmatpush3.msra.mxu0 %v119_v25 }
  0xa5   :  { %1140 = vmatpush3.msra.mxu1 %v1355_v26  ;;  %1133 = vmatmul.mubr.msk.f32.vlgmr.msra.gmra.mxu0 %vm134_vm7, %v305_v28 }
  0xa6   :  { %1142 = vmatmul.mubr.msk.f32.vlgmr.msra.gmra.mxu1 %vm134_vm7, %v393_v29  ;;  %1144 = vmatprep.subr.msk.mxu0 %vm141_vm5, %v129_v27 }
  0xa7   :  { %1153 = vmatprep.subr.msk.mxu1 %vm141_vm5, %v1308_v4  ;;  %1145 = vmatpush3.msk.msra.mxu0 %vm141_vm5, %v129_v27 }
  0xa8   :  { %1150 = vmatprep.mubr.msk.f32.mxu0 %vm134_vm7, %v480_v31  ;;  %1154 = vmatpush3.msk.msra.mxu1 %vm141_vm5, %v1308_v4 }
  0xa9   :  { %1146 = vmatprep.subr.mxu0 %v128_v30  ;;  %1155 = vmatprep.subr.mxu1 %v1316_v7 }
  0xaa   :  { %1147 = vmatpush3.msra.mxu0 %v128_v30  ;;  %1156 = vmatpush3.msra.mxu1 %v1316_v7 }
  0xab   :  { %1148 = vmatprep.subr.mxu0 %v127_v32  ;;  %1157 = vmatprep.subr.mxu1 %v1326_v9 }
  0xac   :  { %1149 = vmatpush3.msra.mxu0 %v127_v32  ;;  %1158 = vmatpush3.msra.mxu1 %v1326_v9 }
  0xad   :  { %1159 = vmatprep.mubr.msk.f32.mxu1 %vm134_vm7, %v580_v33  ;;  %1151 = vmatmul.mubr.msk.f32.vlgmr.msra.gmra.mxu0 %vm134_vm7, %v481_v35 }
  0xae   :  { %1160 = vmatmul.mubr.msk.f32.vlgmr.msra.gmra.mxu1 %vm134_vm7, %v581_v34  ;;  %1162 = vmatprep.subr.msk.mxu0 %vm141_vm5, %v1310_v5 }
  0xaf   :  { %1171 = vmatprep.subr.msk.mxu1 %vm141_vm5, %v1332_v11  ;;  %1163 = vmatpush3.msk.msra.mxu0 %vm141_vm5, %v1310_v5 }
  0xb0   :  { %1168 = vmatprep.mubr.msk.f32.mxu0 %vm134_vm7, %v578_v36  ;;  %1172 = vmatpush3.msk.msra.mxu1 %vm141_vm5, %v1332_v11 }
  0xb1   :  { %1177 = vmatprep.mubr.msk.f32.mxu1 %vm134_vm7, %v744_v37  ;;  %1164 = vmatprep.subr.mxu0 %v1318_v8 }
  0xb2   :  { %1173 = vmatprep.subr.mxu1 %v120_v21  ;;  %1165 = vmatpush3.msra.mxu0 %v1318_v8 }
  0xb3   :  { %1174 = vmatpush3.msra.mxu1 %v120_v21  ;;  %1166 = vmatprep.subr.mxu0 %v1328_v10 }
  0xb4   :  { %1175 = vmatprep.subr.mxu1 %v119_v25  ;;  %1167 = vmatpush3.msra.mxu0 %v1328_v10 }
  0xb5   :  { %1176 = vmatpush3.msra.mxu1 %v119_v25  ;;  %1169 = vmatmul.mubr.msk.f32.vlgmr.msra.gmra.mxu0 %vm134_vm7, %v579_v38 }
  0xb6   :  { %1178 = vmatmul.mubr.msk.f32.vlgmr.msra.gmra.mxu1 %vm134_vm7, %v745_v39  ;;  %1180 = vmatprep.subr.msk.mxu0 %vm141_vm5, %v1334_v12 }
  0xb7   :  { %1189 = vmatprep.subr.msk.mxu1 %vm141_vm5, %v129_v27  ;;  %1181 = vmatpush3.msk.msra.mxu0 %vm141_vm5, %v1334_v12 }
  0xb8   :  { %1186 = vmatprep.mubr.msk.f32.mxu0 %vm134_vm7, %v829_v40  ;;  %1190 = vmatpush3.msk.msra.mxu1 %vm141_vm5, %v129_v27 }
  0xb9   :  { %1195 = vmatprep.mubr.msk.f32.mxu1 %vm134_vm7, %v914_v41  ;;  %1182 = vmatprep.subr.mxu0 %v1348_v22 }
  0xba   :  { %1191 = vmatprep.subr.mxu1 %v128_v30  ;;  %1183 = vmatpush3.msra.mxu0 %v1348_v22 }
  0xbb   :  { %1192 = vmatpush3.msra.mxu1 %v128_v30  ;;  %1184 = vmatprep.subr.mxu0 %v1355_v26 }
  0xbc   :  { %1193 = vmatprep.subr.mxu1 %v127_v32  ;;  %1185 = vmatpush3.msra.mxu0 %v1355_v26 }
  0xbd   :  { %1194 = vmatpush3.msra.mxu1 %v127_v32  ;;  %1187 = vmatmul.mubr.msk.f32.vlgmr.msra.gmra.mxu0 %vm134_vm7, %v830_v42 }
  0xbe   :  { %1196 = vmatmul.mubr.msk.f32.vlgmr.msra.gmra.mxu1 %vm134_vm7, %v915_v43 }
 0x15e   :  { %v1116_v44 = vpop.f32.mrf.mxu0 }
 0x15f   :  { %v1125_v45 = vpop.f32.mrf.mxu1 }
 0x160   :  { %v211_v46 = vpop.f32.mrf.mxu0  ;;  %v301_v49 = vadd.f32 %v1125_v45, %v1116_v44 }
 0x161   :  { %v295_v47 = vpop.f32.mrf.mxu1 }
 0x162   :  { %v296_v51 = vadd.f32 %v295_v47, %v211_v46 }
 0x165   :  { %v1134_v48 = vpop.f32.mrf.mxu0 }
 0x166   :  { %v391_v52 = vadd.f32 %v1134_v48, %v301_v49  ;;  %v1143_v53 = vpop.f32.mrf.mxu1 }
 0x167   :  { %v381_v50 = vpop.f32.mrf.mxu0 }
 0x168   :  { %v390_v54 = vadd.f32 %v381_v50, %v296_v51  ;;  %v479_v55 = vadd.f32 %v1143_v53, %v391_v52  ;;  %v469_v56 = vpop.f32.mrf.mxu1 }
 0x16a   :  { %v478_v58 = vadd.f32 %v469_v56, %v390_v54 }
 0x16d   :  { %v1152_v57 = vpop.f32.mrf.mxu0 }
 0x16e   :  { %v567_v59 = vadd.f32 %v1152_v57, %v479_v55  ;;  %v1161_v62 = vpop.f32.mrf.mxu1 }
 0x16f   :  { %v557_v60 = vpop.f32.mrf.mxu0 }
 0x170   :  { %1212 = vlog2.f32 %v567_v59  ;;  %v566_v61 = vadd.f32 %v557_v60, %v478_v58  ;;  %v654_v63 = vpop.f32.mrf.mxu1 }
 0x172   :  { %1214 = vlog2.f32 %v566_v61 }
 0x175   :  { %v1170_v0 = vpop.f32.mrf.mxu0 }
 0x176   :  { %v1179_v1 = vpop.f32.mrf.mxu1  ;;  %v741_v3 = vadd.f32 %v1170_v0, %v1161_v62 }
 0x177   :  { %v735_v2 = vpop.f32.mrf.mxu0 }
 0x178   :  { %v736_v4 = vadd.f32 %v735_v2, %v654_v63  ;;  %v818_v5 = vpop.f32.mrf.mxu1  ;;  %v828_v6 = vadd.f32 %v1179_v1, %v741_v3 }
 0x17a   :  { %v827_v11 = vadd.f32 %v818_v5, %v736_v4 }
 0x17d   :  { %v1213_v7 = vpop.eup %1212  ;;  %v1188_v8 = vpop.f32.mrf.mxu0 }
 0x17e   :  { %v1197_v9 = vpop.f32.mrf.mxu1  ;;  %v571_v10 = vmul.f32 0.6931472, %v1213_v7  ;;  %v913_v12 = vadd.f32 %v1188_v8, %v828_v6 }
 0x17f   :  { %v1215_v13 = vpop.eup %1214  ;;  %v903_v14 = vpop.f32.mrf.mxu0 }
 0x180   :  { %v573_v15 = vmul.f32 -1.0, %v571_v10  ;;  %v569_v16 = vmul.f32 0.6931472, %v1215_v13  ;;  %v998_v17 = vadd.f32 %v1197_v9, %v913_v12  ;;  %v912_v18 = vadd.f32 %v903_v14, %v827_v11  ;;  %v988_v19 = vpop.f32.mrf.mxu1 }
 0x182   :  { %v572_v20 = vmul.f32 -1.0, %v569_v16  ;;  %1216 = vlog2.f32 %v998_v17  ;;  %v997_v21 = vadd.f32 %v988_v19, %v912_v18  ;;  %576 = vst.msk [vmem:[#allocation8 + $0x8] sm:$0xff] %vm574_vm8, %v573_v15 }
 0x184   :  { %1218 = vlog2.f32 %v997_v21  ;;  %575 = vst.msk [vmem:[#allocation8] sm:$0xff] %vm574_vm8, %v572_v20 }
 0x18f   :  { %v1217_v22 = vpop.eup %1216 }
 0x190   :  { %v1002_v23 = vmul.f32 0.6931472, %v1217_v22 }
 0x191   :  { %v1219_v24 = vpop.eup %1218 }
 0x192   :  { %v1004_v25 = vmul.f32 -1.0, %v1002_v23  ;;  %v1000_v26 = vmul.f32 0.6931472, %v1219_v24 }
 0x194   :  { %v1003_v27 = vmul.f32 -1.0, %v1000_v26  ;;  %1007 = vst.msk [vmem:[#allocation8 + $0x18] sm:$0xff] %vm574_vm8, %v1004_v25 }
 0x196   :  { %1006 = vst.msk [vmem:[#allocation8 + $0x10] sm:$0xff] %vm574_vm8, %v1003_v27 }
 0x197   :  { %1251 = shalt.err (!%p1248_p9)
}
 0x198   :  { %1019 = dma.vmem_to_hbm [thread:$0]  %s1014_s30, 512, %s1420_s2, [#allocation5], %s1267_s12, %s1267_s12, %s1268_s13  }
 0x199   :  { %1264 = dma.done.wait [#allocation5], 512  }
 0x19a   :  { %1265 = vsyncadd [#allocation5], 4294966784 }
 0x19b   :  { %1023 = vsyncpa [#allocation4], 1 }
 0x19c   :  { %1024 = vsyncpa [#allocation7], 1 }
 0x19d   :  { %1025 = vsyncpa [#allocation5], 1 }

</bundles_post_ra>
